<compile_context>
chip_gen: v6e
topology: v6e:2x2x1
jax: 0.10.0
libtpu: 0.0.40
codegen_flags: <defaults>
</compile_context>

<pallas_src>
from functools import partial

import numpy as np
import jax
import jax.numpy as jnp
from jax.experimental import pallas as pl
from jax.experimental.pallas import tpu as pltpu

HIDDEN = 64                              # lstm_hidden == mlp_hidden == input_dim == 64
NUM_ACTIONS = 6
RAW_DIM = 4 + 36 + 8 + 2 + 2 + 25 + 2    # 79
PAD = 128                                # lane-aligned raw width
STATE_COLS = 2 * PAD                     # [0|h] + [c|0]

# column offsets inside the packed weight/bias slabs (all 128-aligned)
C_PROJ = 0
C_LSTM = 128        # [i|f] at 128:256, [g|o] at 256:384
C_HEAD1 = 384
C_HEAD2 = 512
SLAB_COLS = 640


# ---------------------------------------------------------------------------
# Pallas kernel: full AntNet forward (projections -> LSTM step -> heads)
# ---------------------------------------------------------------------------
def antnet_kernel(raw_ref, state_ref, w_ref, b_ref, heads_ref, state_out_ref):
    f32, bf16 = jnp.float32, jnp.bfloat16
    relu = lambda z: jnp.maximum(z, 0.0)

    # Read ALL inputs before any store (state_ref is aliased to state_out_ref).
    raw = raw_ref[...]                      # (Bt,128) f32, lanes 79:128 zero
    state = state_ref[...]                  # (Bt,256) f32
    h0pad = state[:, 0:PAD]                 # [0 | h0]
    c0pad = state[:, PAD:STATE_COLS]        # [c0 | 0]

    # --- all per-modality projections fused into one matmul (conv included) ---
    x = relu(jnp.dot(raw.astype(bf16), w_ref[:, C_PROJ:C_PROJ + 128],
                     preferred_element_type=f32)
             + b_ref[:, C_PROJ:C_PROJ + 128])            # (Bt,128), x in 0:64
    xh = x + h0pad                                       # (Bt,128) = [x | h0]

    # --- LSTM single step: one (Bt,128)x(128,256) matmul, gates packed
    #     [i|f] in cols 0:128 and [g|o] in cols 128:256 (PyTorch order) ---
    gates = (jnp.dot(xh.astype(bf16), w_ref[:, C_LSTM:C_LSTM + 256],
                     preferred_element_type=f32)
             + b_ref[:, C_LSTM:C_LSTM + 256])            # (Bt,256)
    if_blk = jax.nn.sigmoid(gates[:, 0:128])             # [i | f]
    go_raw = gates[:, 128:256]
    lane = jax.lax.broadcasted_iota(jnp.int32, go_raw.shape, 1)
    lo = lane < HIDDEN                                    # lanes 0:64
    go_blk = jnp.where(lo, jnp.tanh(go_raw), jax.nn.sigmoid(go_raw))   # [g | o]

    fi_blk = pltpu.roll(if_blk, shift=HIDDEN, axis=1)     # [f | i]
    og_blk = pltpu.roll(go_blk, shift=HIDDEN, axis=1)     # [o | g]
    # lanes 0:64: f*c0 + i*g ; lanes 64:128 masked to 0 (c stays [c|0])
    c_new = jnp.where(lo, fi_blk * c0pad + if_blk * go_blk, 0.0)
    # lanes 0:64: o*tanh(c) ; lanes 64:128: g*tanh(0)=0  -> h stays [h|0]
    h_new = og_blk * jnp.tanh(c_new)

    # --- fused actor/critic heads ---
    hid = relu(jnp.dot(h_new.astype(bf16), w_ref[:, C_HEAD1:C_HEAD1 + 128],
                       preferred_element_type=f32)
               + b_ref[:, C_HEAD1:C_HEAD1 + 128])        # [a_hid | v_hid]
    heads = (jnp.dot(hid.astype(bf16), w_ref[:, C_HEAD2:C_HEAD2 + 128],
                     preferred_element_type=f32)
             + b_ref[:, C_HEAD2:C_HEAD2 + 128])          # logits 0:6, value @8

    # --- lane-dense stores; state written in the layout it is consumed in ---
    heads_ref[...] = heads
    state_out_ref[:, 0:PAD] = pltpu.roll(h_new, shift=HIDDEN, axis=1)  # [0 | h]
    state_out_ref[:, PAD:STATE_COLS] = c_new                           # [c | 0]


# ---------------------------------------------------------------------------
# Batched forward step (jitted); weights stay resident across batch tiles
# ---------------------------------------------------------------------------
@partial(jax.jit, static_argnames=("b_tile",))
def antnet_step(w_slab, b_slab, raw, state, b_tile=8):
    B = raw.shape[0]
    assert B % b_tile == 0 and b_tile % 8 == 0
    grid = (B // b_tile,)
    call = pl.pallas_call(
        antnet_kernel,
        out_shape=(jax.ShapeDtypeStruct((B, PAD), jnp.float32),
                   jax.ShapeDtypeStruct((B, STATE_COLS), jnp.float32)),
        grid=grid,
        in_specs=[
            pl.BlockSpec((b_tile, PAD), lambda i: (i, 0)),          # raw tile
            pl.BlockSpec((b_tile, STATE_COLS), lambda i: (i, 0)),   # state tile
            pl.BlockSpec((PAD, SLAB_COLS), lambda i: (0, 0)),       # weights: resident
            pl.BlockSpec((1, SLAB_COLS), lambda i: (0, 0)),         # biases:  resident
        ],
        out_specs=(
            pl.BlockSpec((b_tile, PAD), lambda i: (i, 0)),          # heads tile
            pl.BlockSpec((b_tile, STATE_COLS), lambda i: (i, 0)),   # new state tile
        ),
        input_output_aliases={1: 1},   # state buffer reused for new state
        compiler_params=pltpu.CompilerParams(
            dimension_semantics=("parallel",)),
    )
    heads, new_state = call(raw, state, w_slab, b_slab)
    logits = heads[:, :NUM_ACTIONS]
    value = heads[:, 8:9]
    return logits, value, new_state


def init_state(batch):
    return jnp.zeros((batch, STATE_COLS), jnp.float32)


def state_to_hc(state):
    return state[:, HIDDEN:2 * HIDDEN], state[:, 2 * HIDDEN:3 * HIDDEN]


def pack_raw(inputs):
    """Batched raw-feature slab (B, 128).  In a real simulation, write features
    directly into a persistent device buffer instead of concatenating."""
    B = inputs['vision'].shape[0]
    feats = jnp.concatenate([
        inputs['tile_under'].reshape(B, -1),
        inputs['vision'].reshape(B, -1),       # (4,3,3) row-major == (C,H,W)
        inputs['direction'].reshape(B, -1),
        inputs['flags'].reshape(B, -1),
        inputs['coords'].reshape(B, -1),
        inputs['nearby_ants'].reshape(B, -1),
        inputs['colony'].reshape(B, -1),
    ], axis=1).astype(jnp.float32)
    return jnp.pad(feats, ((0, 0), (0, PAD - RAW_DIM)))


# ---------------------------------------------------------------------------
# Parameter init (deterministic, PyTorch-default-style uniform init)
# ---------------------------------------------------------------------------
def init_params(key):
    ks = jax.random.split(key, 16)

    def lin(k, fan_in, fan_out):
        k1, k2 = jax.random.split(k)
        bound = 1.0 / np.sqrt(fan_in)
        w = jax.random.uniform(k1, (fan_out, fan_in), jnp.float32, -bound, bound)
        b = jax.random.uniform(k2, (fan_out,), jnp.float32, -bound, bound)
        return w, b

    p = {}
    kc1, kc2 = jax.random.split(ks[0])
    cb = 1.0 / np.sqrt(4 * 2 * 2)
    p['conv_w'] = jax.random.uniform(kc1, (8, 4, 2, 2), jnp.float32, -cb, cb)
    p['conv_b'] = jax.random.uniform(kc2, (8,), jnp.float32, -cb, cb)
    p['tile'] = lin(ks[1], 4, 4)
    p['dir'] = lin(ks[2], 8, 8)
    p['flags'] = lin(ks[3], 2, 4)
    p['coords'] = lin(ks[4], 2, 4)
    p['nearby'] = lin(ks[5], 25, 8)
    p['colony'] = lin(ks[6], 2, 4)
    lb = 1.0 / np.sqrt(HIDDEN)
    p['w_ih'] = jax.random.uniform(ks[7], (4 * HIDDEN, HIDDEN), jnp.float32, -lb, lb)
    p['w_hh'] = jax.random.uniform(ks[8], (4 * HIDDEN, HIDDEN), jnp.float32, -lb, lb)
    p['b_ih'] = jax.random.uniform(ks[9], (4 * HIDDEN,), jnp.float32, -lb, lb)
    p['b_hh'] = jax.random.uniform(ks[10], (4 * HIDDEN,), jnp.float32, -lb, lb)
    p['actor1'] = lin(ks[11], HIDDEN, HIDDEN)
    p['actor2'] = lin(ks[12], HIDDEN, NUM_ACTIONS)
    p['critic1'] = lin(ks[13], HIDDEN, HIDDEN)
    p['critic2'] = lin(ks[14], HIDDEN, 1)
    return p


# ---------------------------------------------------------------------------
# One-time host-side packing into bf16 (128, 640) + f32 (1, 640) slabs
# ---------------------------------------------------------------------------
def prepare_params(p):
    W = np.zeros((PAD, SLAB_COLS), np.float32)
    b = np.zeros((1, SLAB_COLS), np.float32)

    # ---- projection block -------------------------------------------------
    # rows: tile 0:4 | vision 4:40 | dir 40:48 | flags 48:50 | coords 50:52
    #       nearby 52:77 | colony 77:79 | zero-pad 79:128
    # cols: tile 0:4 | vision 4:36 | dir 36:44 | flags 44:48 | coords 48:52
    #       nearby 52:60 | colony 60:64 | zero-pad 64:128
    def put(name, r0, c0):
        w, bb = p[name]
        w = np.asarray(w)
        W[r0:r0 + w.shape[1], C_PROJ + c0:C_PROJ + c0 + w.shape[0]] = w.T
        b[0, C_PROJ + c0:C_PROJ + c0 + w.shape[0]] = np.asarray(bb)

    put('tile', 0, 0)
    put('dir', 40, 36)
    put('flags', 48, 44)
    put('coords', 50, 48)
    put('nearby', 52, 52)
    put('colony', 77, 60)

    # Conv2d(4,8,k=2) on (4,3,3) -> (8,2,2), flattened channel-major.
    cw = np.asarray(p['conv_w'])   # (out=8, in=4, kh=2, kw=2)
    for co in range(8):
        for oh in range(2):
            for ow in range(2):
                col = C_PROJ + 4 + co * 4 + oh * 2 + ow
                for ci in range(4):
                    for di in range(2):
                        for dj in range(2):
                            row = 4 + ci * 9 + (oh + di) * 3 + (ow + dj)
                            W[row, col] = cw[co, ci, di, dj]
    b[0, C_PROJ + 4:C_PROJ + 36] = np.repeat(np.asarray(p['conv_b']), 4)

    # ---- fused LSTM: rows 0:64 = W_ih^T, rows 64:128 = W_hh^T --------------
    # gates packed [i|f] in cols 128:256 and [g|o] in cols 256:384 (no padding)
    w_ih = np.asarray(p['w_ih'])
    w_hh = np.asarray(p['w_hh'])
    b_l = np.asarray(p['b_ih']) + np.asarray(p['b_hh'])
    H = HIDDEN
    for k in range(4):                       # PyTorch gate order i,f,g,o
        c0 = C_LSTM + 64 * k
        W[0:64, c0:c0 + 64] = w_ih[k * H:(k + 1) * H, :].T
        W[64:128, c0:c0 + 64] = w_hh[k * H:(k + 1) * H, :].T
        b[0, c0:c0 + 64] = b_l[k * H:(k + 1) * H]

    # ---- head layer 1: [actor1 | critic1] ----------------------------------
    wa1, ba1 = p['actor1']
    wc1, bc1 = p['critic1']
    W[0:64, C_HEAD1:C_HEAD1 + 64] = np.asarray(wa1).T
    W[0:64, C_HEAD1 + 64:C_HEAD1 + 128] = np.asarray(wc1).T
    b[0, C_HEAD1:C_HEAD1 + 64] = np.asarray(ba1)
    b[0, C_HEAD1 + 64:C_HEAD1 + 128] = np.asarray(bc1)

    # ---- head layer 2: logits at cols 0:6, value at col 8 ------------------
    wa2, ba2 = p['actor2']
    wc2, bc2 = p['critic2']
    W[0:64, C_HEAD2:C_HEAD2 + NUM_ACTIONS] = np.asarray(wa2).T
    b[0, C_HEAD2:C_HEAD2 + NUM_ACTIONS] = np.asarray(ba2)
    W[64:128, C_HEAD2 + 8:C_HEAD2 + 9] = np.asarray(wc2).T
    b[0, C_HEAD2 + 8] = np.asarray(bc2)[0]

    # bf16 weight slab (half the DMA, native MXU dtype); f32 biases.
    return jnp.asarray(W, dtype=jnp.bfloat16), jnp.asarray(b, dtype=jnp.float32)


# ---------------------------------------------------------------------------
# Pure-JAX reference (mirrors the PyTorch module, eval mode) for validation
# ---------------------------------------------------------------------------
def ref_forward(inputs, params, h0=None, c0=None):
    def proj(x, wb):
        w, bb = wb
        return jnp.maximum(x @ w.T + bb, 0.0)

    B = inputs['vision'].shape[0]
    conv = jax.lax.conv_general_dilated(
        inputs['vision'].astype(jnp.float32), params['conv_w'], (1, 1), 'VALID',
        dimension_numbers=('NCHW', 'OIHW', 'NCHW'))
    conv = conv + params['conv_b'][None, :, None, None]
    v = jnp.maximum(conv, 0.0).reshape(B, -1)                    # (B,32)

    t = proj(inputs['tile_under'], params['tile'])
    d = proj(inputs['direction'], params['dir'])
    f = proj(inputs['flags'], params['flags'])
    c = proj(inputs['coords'], params['coords'])
    n = proj(inputs['nearby_ants'], params['nearby'])
    cl = proj(inputs['colony'], params['colony'])
    x = jnp.concatenate([t, v, d, f, c, n, cl], axis=1)          # (B,64)

    if h0 is None:
        h0 = jnp.zeros((B, HIDDEN), jnp.float32)
    if c0 is None:
        c0 = jnp.zeros((B, HIDDEN), jnp.float32)
    gates = (x @ params['w_ih'].T + h0 @ params['w_hh'].T
             + params['b_ih'] + params['b_hh'])
    H = HIDDEN
    i_g = jax.nn.sigmoid(gates[:, :H])
    f_g = jax.nn.sigmoid(gates[:, H:2 * H])
    g_g = jnp.tanh(gates[:, 2 * H:3 * H])
    o_g = jax.nn.sigmoid(gates[:, 3 * H:])
    c_s = f_g * c0 + i_g * g_g
    h = o_g * jnp.tanh(c_s)

    a = jnp.maximum(h @ params['actor1'][0].T + params['actor1'][1], 0.0)
    logits = a @ params['actor2'][0].T + params['actor2'][1]
    vv = jnp.maximum(h @ params['critic1'][0].T + params['critic1'][1], 0.0)
    value = vv @ params['critic2'][0].T + params['critic2'][1]
    return logits, value, h, c_s


# ---------------------------------------------------------------------------
if __name__ == "__main__":
    B = 16          # number of ants (small demo; use hundreds+ in production)
    B_TILE = 8      # batch tile (multiple of 8 sublanes)

    key = jax.random.PRNGKey(0)
    k_in, k_par = jax.random.split(key)
    ki = jax.random.split(k_in, 7)

    # Shapes implied by the module: vision (4,3,3) so that
    # 4 + 8*2*2 + 8 + 4 + 4 + 8 + 4 == 64 == lstm input_dim.
    inputs = {
        'vision':      jax.random.normal(ki[0], (B, 4, 3, 3), jnp.float32),
        'direction':   jax.random.normal(ki[1], (B, 8), jnp.float32),
        'flags':       jax.random.normal(ki[2], (B, 2), jnp.float32),
        'coords':      jax.random.normal(ki[3], (B, 2), jnp.float32),
        'nearby_ants': jax.random.normal(ki[4], (B, 25), jnp.float32),
        'colony':      jax.random.normal(ki[5], (B, 2), jnp.float32),
        'tile_under':  jax.random.normal(ki[6], (B, 4), jnp.float32),
    }
    params = init_params(k_par)
    w_slab, b_slab = prepare_params(params)      # one-time numpy packing

    raw = pack_raw(inputs)
    state0 = init_state(B)

    # step 1: fresh hidden state
    logits, value, state1 = antnet_step(w_slab, b_slab, raw, state0, b_tile=B_TILE)
    jax.block_until_ready((logits, value, state1))
    h1, c1 = state_to_hc(state1)

    # step 2: feed the recurrent state back in (exercises h0/c0 path, no reassembly)
    logits2, value2, state2 = antnet_step(w_slab, b_slab, raw, state1, b_tile=B_TILE)
    jax.block_until_ready((logits2, value2, state2))
    h2, c2 = state_to_hc(state2)

    # Validate against the pure-JAX reference of the PyTorch forward.
    # bf16 weight slab -> loosened tolerances.
    r_l, r_v, r_h, r_c = ref_forward(inputs, params)
    np.testing.assert_allclose(np.asarray(logits), np.asarray(r_l), rtol=3e-2, atol=3e-2)
    np.testing.assert_allclose(np.asarray(value), np.asarray(r_v), rtol=3e-2, atol=3e-2)
    np.testing.assert_allclose(np.asarray(h1), np.asarray(r_h), rtol=3e-2, atol=3e-2)
    np.testing.assert_allclose(np.asarray(c1), np.asarray(r_c), rtol=3e-2, atol=3e-2)

    r_l2, r_v2, r_h2, r_c2 = ref_forward(inputs, params, r_h, r_c)
    np.testing.assert_allclose(np.asarray(logits2), np.asarray(r_l2), rtol=5e-2, atol=5e-2)
    np.testing.assert_allclose(np.asarray(value2), np.asarray(r_v2), rtol=5e-2, atol=5e-2)
    np.testing.assert_allclose(np.asarray(h2), np.asarray(r_h2), rtol=5e-2, atol=5e-2)
    np.testing.assert_allclose(np.asarray(c2), np.asarray(r_c2), rtol=5e-2, atol=5e-2)

    print("KERNEL_OK")
</pallas_src>

<mosaic_0001>
module attributes {stable_mosaic.version = 11 : i64} {
  func.func @antnet_kernel(%arg0: i32, %arg1: memref<8x128xf32, #tpu.memory_space<vmem>>, %arg2: memref<8x256xf32, #tpu.memory_space<vmem>>, %arg3: memref<128x640xbf16, #tpu.memory_space<vmem>>, %arg4: memref<1x640xf32, #tpu.memory_space<vmem>>, %arg5: memref<8x128xf32, #tpu.memory_space<vmem>>, %arg6: memref<8x256xf32, #tpu.memory_space<vmem>>) attributes {dimension_semantics = [#tpu.dimension_semantics<parallel>], iteration_bounds = array<i64: 2>, scalar_prefetch = 0 : i64, scratch_operands = 0 : i64, tpu.core_type = #tpu.core_type<tc>, window_params = [{transform_indices = @transform_0, window_bounds = array<i64: 8, 128>}, {transform_indices = @transform_1, window_bounds = array<i64: 8, 256>}, {pipeline_mode = #tpu.pipeline_mode<synchronous>, transform_indices = @transform_2, window_bounds = array<i64: 128, 640>}, {pipeline_mode = #tpu.pipeline_mode<synchronous>, transform_indices = @transform_3, window_bounds = array<i64: 1, 640>}, {transform_indices = @transform_4, window_bounds = array<i64: 8, 128>}, {transform_indices = @transform_5, window_bounds = array<i64: 8, 256>}]} {
    %c0 = arith.constant 0 : index
    %c0_0 = arith.constant 0 : index
    %0 = vector.load %arg1[%c0, %c0_0] : memref<8x128xf32, #tpu.memory_space<vmem>>, vector<8x128xf32>
    %c0_1 = arith.constant 0 : index
    %c0_2 = arith.constant 0 : index
    %1 = vector.load %arg2[%c0_1, %c0_2] : memref<8x256xf32, #tpu.memory_space<vmem>>, vector<8x256xf32>
    %2 = vector.extract_strided_slice %1 {offsets = [0, 0], sizes = [8, 128], strides = [1, 1]} : vector<8x256xf32> to vector<8x128xf32>
    %3 = vector.extract_strided_slice %1 {offsets = [0, 128], sizes = [8, 128], strides = [1, 1]} : vector<8x256xf32> to vector<8x128xf32>
    %4 = arith.truncf %0 : vector<8x128xf32> to vector<8x128xbf16>
    %c0_3 = arith.constant 0 : index
    %c0_4 = arith.constant 0 : index
    %5 = vector.load %arg3[%c0_3, %c0_4] : memref<128x640xbf16, #tpu.memory_space<vmem>>, vector<128x128xbf16>
    %cst = arith.constant dense<0.000000e+00> : vector<8x128xf32>
    %6 = tpu.matmul %4, %5, %cst {dimension_numbers = #tpu.dot_dimension_numbers<[1], [0], [0], [1], [0, 0, 1, 1], [], []>} : vector<8x128xbf16>, vector<128x128xbf16>, vector<8x128xf32> -> vector<8x128xf32>
    %c0_5 = arith.constant 0 : index
    %c0_6 = arith.constant 0 : index
    %7 = vector.load %arg4[%c0_5, %c0_6] : memref<1x640xf32, #tpu.memory_space<vmem>>, vector<1x128xf32>
    %8 = vector.broadcast %7 : vector<1x128xf32> to vector<8x128xf32>
    %9 = arith.addf %6, %8 : vector<8x128xf32>
    %cst_7 = arith.constant 0.000000e+00 : f32
    %10 = vector.broadcast %cst_7 : f32 to vector<8x128xf32>
    %11 = arith.maximumf %9, %10 : vector<8x128xf32>
    %12 = arith.addf %11, %2 : vector<8x128xf32>
    %13 = arith.truncf %12 : vector<8x128xf32> to vector<8x128xbf16>
    %c0_8 = arith.constant 0 : index
    %c128 = arith.constant 128 : index
    %14 = vector.load %arg3[%c0_8, %c128] : memref<128x640xbf16, #tpu.memory_space<vmem>>, vector<128x256xbf16>
    %cst_9 = arith.constant dense<0.000000e+00> : vector<8x256xf32>
    %15 = tpu.matmul %13, %14, %cst_9 {dimension_numbers = #tpu.dot_dimension_numbers<[1], [0], [0], [1], [0, 0, 1, 1], [], []>} : vector<8x128xbf16>, vector<128x256xbf16>, vector<8x256xf32> -> vector<8x256xf32>
    %c0_10 = arith.constant 0 : index
    %c128_11 = arith.constant 128 : index
    %16 = vector.load %arg4[%c0_10, %c128_11] : memref<1x640xf32, #tpu.memory_space<vmem>>, vector<1x256xf32>
    %17 = vector.broadcast %16 : vector<1x256xf32> to vector<8x256xf32>
    %18 = arith.addf %15, %17 : vector<8x256xf32>
    %19 = vector.extract_strided_slice %18 {offsets = [0, 0], sizes = [8, 128], strides = [1, 1]} : vector<8x256xf32> to vector<8x128xf32>
    %20 = arith.negf %19 : vector<8x128xf32>
    %21 = math.exp %20 : vector<8x128xf32>
    %cst_12 = arith.constant 1.000000e+00 : f32
    %22 = vector.broadcast %cst_12 : f32 to vector<8x128xf32>
    %23 = arith.addf %22, %21 : vector<8x128xf32>
    %24 = arith.divf %22, %23 : vector<8x128xf32>
    %25 = vector.extract_strided_slice %18 {offsets = [0, 128], sizes = [8, 128], strides = [1, 1]} : vector<8x256xf32> to vector<8x128xf32>
    %26 = tpu.iota {dimensions = array<i32: 1>} : vector<8x128xi32>
    %c64_i32 = arith.constant 64 : i32
    %27 = vector.broadcast %c64_i32 : i32 to vector<8x128xi32>
    %28 = arith.cmpi slt, %26, %27 : vector<8x128xi32>
    %29 = math.tanh %25 : vector<8x128xf32>
    %30 = arith.negf %25 : vector<8x128xf32>
    %31 = math.exp %30 : vector<8x128xf32>
    %cst_13 = arith.constant 1.000000e+00 : f32
    %32 = vector.broadcast %cst_13 : f32 to vector<8x128xf32>
    %33 = arith.addf %32, %31 : vector<8x128xf32>
    %34 = arith.divf %32, %33 : vector<8x128xf32>
    %35 = arith.select %28, %29, %34 : vector<8x128xi1>, vector<8x128xf32>
    %c64_i32_14 = arith.constant 64 : i32
    %36 = tpu.dynamic_rotate %24 by %c64_i32_14 dim 1 : vector<8x128xf32>, i32 -> vector<8x128xf32>
    %c64_i32_15 = arith.constant 64 : i32
    %37 = tpu.dynamic_rotate %35 by %c64_i32_15 dim 1 : vector<8x128xf32>, i32 -> vector<8x128xf32>
    %38 = arith.mulf %36, %3 : vector<8x128xf32>
    %39 = arith.mulf %24, %35 : vector<8x128xf32>
    %40 = arith.addf %38, %39 : vector<8x128xf32>
    %cst_16 = arith.constant 0.000000e+00 : f32
    %41 = vector.broadcast %cst_16 : f32 to vector<8x128xf32>
    %42 = arith.select %28, %40, %41 : vector<8x128xi1>, vector<8x128xf32>
    %43 = math.tanh %42 : vector<8x128xf32>
    %44 = arith.mulf %37, %43 : vector<8x128xf32>
    %45 = arith.truncf %44 : vector<8x128xf32> to vector<8x128xbf16>
    %c0_17 = arith.constant 0 : index
    %c384 = arith.constant 384 : index
    %46 = vector.load %arg3[%c0_17, %c384] : memref<128x640xbf16, #tpu.memory_space<vmem>>, vector<128x128xbf16>
    %cst_18 = arith.constant dense<0.000000e+00> : vector<8x128xf32>
    %47 = tpu.matmul %45, %46, %cst_18 {dimension_numbers = #tpu.dot_dimension_numbers<[1], [0], [0], [1], [0, 0, 1, 1], [], []>} : vector<8x128xbf16>, vector<128x128xbf16>, vector<8x128xf32> -> vector<8x128xf32>
    %c0_19 = arith.constant 0 : index
    %c384_20 = arith.constant 384 : index
    %48 = vector.load %arg4[%c0_19, %c384_20] : memref<1x640xf32, #tpu.memory_space<vmem>>, vector<1x128xf32>
    %49 = vector.broadcast %48 : vector<1x128xf32> to vector<8x128xf32>
    %50 = arith.addf %47, %49 : vector<8x128xf32>
    %cst_21 = arith.constant 0.000000e+00 : f32
    %51 = vector.broadcast %cst_21 : f32 to vector<8x128xf32>
    %52 = arith.maximumf %50, %51 : vector<8x128xf32>
    %53 = arith.truncf %52 : vector<8x128xf32> to vector<8x128xbf16>
    %c0_22 = arith.constant 0 : index
    %c512 = arith.constant 512 : index
    %54 = vector.load %arg3[%c0_22, %c512] : memref<128x640xbf16, #tpu.memory_space<vmem>>, vector<128x128xbf16>
    %cst_23 = arith.constant dense<0.000000e+00> : vector<8x128xf32>
    %55 = tpu.matmul %53, %54, %cst_23 {dimension_numbers = #tpu.dot_dimension_numbers<[1], [0], [0], [1], [0, 0, 1, 1], [], []>} : vector<8x128xbf16>, vector<128x128xbf16>, vector<8x128xf32> -> vector<8x128xf32>
    %c0_24 = arith.constant 0 : index
    %c512_25 = arith.constant 512 : index
    %56 = vector.load %arg4[%c0_24, %c512_25] : memref<1x640xf32, #tpu.memory_space<vmem>>, vector<1x128xf32>
    %57 = vector.broadcast %56 : vector<1x128xf32> to vector<8x128xf32>
    %58 = arith.addf %55, %57 : vector<8x128xf32>
    %c0_26 = arith.constant 0 : index
    %c0_27 = arith.constant 0 : index
    %59 = vector.load %arg5[%c0_26, %c0_27] : memref<8x128xf32, #tpu.memory_space<vmem>>, vector<8x128xf32>
    tpu.vector_store %arg5[%c0_26, %c0_27], %58 {strides = array<i32>} : memref<8x128xf32, #tpu.memory_space<vmem>>, vector<8x128xf32>,
    %c64_i32_28 = arith.constant 64 : i32
    %60 = tpu.dynamic_rotate %44 by %c64_i32_28 dim 1 : vector<8x128xf32>, i32 -> vector<8x128xf32>
    %c0_29 = arith.constant 0 : index
    %c0_30 = arith.constant 0 : index
    %61 = vector.load %arg6[%c0_29, %c0_30] : memref<8x256xf32, #tpu.memory_space<vmem>>, vector<8x128xf32>
    tpu.vector_store %arg6[%c0_29, %c0_30], %60 {strides = array<i32>} : memref<8x256xf32, #tpu.memory_space<vmem>>, vector<8x128xf32>,
    %c0_31 = arith.constant 0 : index
    %c128_32 = arith.constant 128 : index
    %62 = vector.load %arg6[%c0_31, %c128_32] : memref<8x256xf32, #tpu.memory_space<vmem>>, vector<8x128xf32>
    tpu.vector_store %arg6[%c0_31, %c128_32], %42 {strides = array<i32>} : memref<8x256xf32, #tpu.memory_space<vmem>>, vector<8x128xf32>,
    return
  }
  func.func @transform_0(%arg0: i32) -> (i32, i32) {
    %c0_i32 = arith.constant 0 : i32
    %c0_i32_0 = arith.constant 0 : i32
    return %arg0, %c0_i32 : i32, i32
  }
  func.func @transform_1(%arg0: i32) -> (i32, i32) {
    %c0_i32 = arith.constant 0 : i32
    %c0_i32_0 = arith.constant 0 : i32
    return %arg0, %c0_i32 : i32, i32
  }
  func.func @transform_2(%arg0: i32) -> (i32, i32) {
    %c0_i32 = arith.constant 0 : i32
    %c0_i32_0 = arith.constant 0 : i32
    %c0_i32_1 = arith.constant 0 : i32
    return %c0_i32, %c0_i32_0 : i32, i32
  }
  func.func @transform_3(%arg0: i32) -> (i32, i32) {
    %c0_i32 = arith.constant 0 : i32
    %c0_i32_0 = arith.constant 0 : i32
    %c0_i32_1 = arith.constant 0 : i32
    return %c0_i32, %c0_i32_0 : i32, i32
  }
  func.func @transform_4(%arg0: i32) -> (i32, i32) {
    %c0_i32 = arith.constant 0 : i32
    %c0_i32_0 = arith.constant 0 : i32
    return %arg0, %c0_i32 : i32, i32
  }
  func.func @transform_5(%arg0: i32) -> (i32, i32) {
    %c0_i32 = arith.constant 0 : i32
    %c0_i32_0 = arith.constant 0 : i32
    return %arg0, %c0_i32 : i32, i32
  }
}

</mosaic_0001>

<bundles_post_ra>
// kernel: antnet_step.1
= control target key start
LH: loop header
LB: loop body
LE: loop exit
PB: predicated region body
PF: predicated region fallthrough
CT: control target
= control target key end

     0   :  { %11 = vsyncpa [#allocation3], 0  ;;  %s1212_s18 = smov 0   ;;  %s1324_s0 = inlined_call_operand.vmem [shape: f32[16,128], index: 0, kind: input, shape index: {}]   ;;  %s1325_s1 = inlined_call_operand.vmem [shape: f32[16,256], index: 1, kind: input, shape index: {}, may-alias: {1,5}]   ;;  %s1326_s2 = inlined_call_operand.hbm [shape: bf16[128,640], index: 2, kind: input, shape index: {}]   ;;  %s1327_s3 = inlined_call_operand.vmem [shape: f32[1,640], index: 3, kind: input, shape index: {}]   ;;  %s1328_s4 = inlined_call_operand.vmem [shape: f32[16,128], index: 4, kind: output, shape index: {0}]   ;;  %s1329_s5 = inlined_call_operand.vmem [shape: f32[16,256], index: 5, kind: output, shape index: {1}, may-alias: {1,5}]  }
   0x1 LB: > { %s1218_s19 = sadd.s32 4294967295, %s1173_s18   ;;  %p905_p0 = scmp.ge.s32.totalorder %s1173_s18, 1  ;;  %s1173_s18 = sphi %s1212_s18, %s17_s18  }
   0x2   : > { %p168_p1 = scmp.lt.s32.totalorder %s1173_s18, 3  ;;  %s1175_s20 = smov [#allocation2]  }
   0x3   : > { %s180_s21 = sshll.u32 %s1175_s20, 4  ;;  %p1060_p3 = scmp.eq.s32.totalorder %s1218_s19, 0  ;;  %s181_s21 = int_to_ptr.vmem [resolvable:$true] %s180_s21 }
   0x4   : > { %p1222_p2 = pnand %p905_p0, %p168_p1  ;;  %s1148_s23 = scalar_lea.vmem %s181_s21, 5120 }
   0x5   : > { %p1149_p7 = scmp.ne.s32.totalorder %s181_s21, %s1148_s23  ;;  %p1156_p10 = scmp.lt.s32.totalorder %s181_s21, %s181_s21 }
   0x6   : > { %p1056_p4 = pneg %p1222_p2  ;;  %p1157_p11 = scmp.lt.s32.totalorder %s1148_s23, %s1148_s23 }
   0x8   : > { %p1057_p5 = pnand %p1060_p3, %p1056_p4  ;;  %p1158_p12 = por %p1157_p11, %p1156_p10 }
   0xa   : > { %p1139_p6 = pneg %p1057_p5 }
   0xc   : > { %p1151_p8 = pnand %p1149_p7, %p1139_p6 }
   0xe   : > { %p1152_p9 = pneg %p1151_p8 }
  0x10   : > { %p1159_p13 = pnand %p1158_p12, %p1152_p9 }
  0x12   : > { %1162 = shalt.err (!%p1159_p13)
}
  0x13   : > { %s1176_s24 = smov 320   ;;  %s1177_s25 = smov 20  }
  0x14   : > { %1059 = dma.hbm_to_vmem [thread:$0]  (!%p1057_p5), %s1326_s2, 5120, %s181_s21, [#allocation3], %s1176_s24, %s1176_s24, %s1177_s25  }
  0x15   : > { %214 = sbr.rel (%p1222_p2) target bundleno = 1024 (0x400), region = 36 }
  0x1a   : > { %1168 = dma.done.wait (%p1060_p3), [#allocation3], 5120  }
  0x1b   : > { %1170 = vsyncadd (%p1060_p3), [#allocation3], 4294962176  ;;  %v1178_v0 = vmov 0.0   ;;  %vm1179_vm0 = vmmov 0   ;;  %v1077_v1 = vld [vmem:[#allocation2 + $0x118] ss:$20 sps:$4 sm:$0xff]   ;;  %v405_v40 = vlaneseq }
  0x1c   : > { %992 = vmatprep.subr.bf16.mxu0 %v1178_v0  ;;  %1008 = vmatprep.mubr.msk.bf16.mxu0 %vm1179_vm0, %v1178_v0  ;;  %v1078_v2 = vld [vmem:[#allocation2 + $0xf0] ss:$20 sps:$4 sm:$0xff]   ;;  %v1079_v3 = vld [vmem:[#allocation2 + $0xc8] ss:$20 sps:$4 sm:$0xff]   ;;  %v1085_v4 = vld [vmem:[#allocation2 + $0x120] ss:$20 sps:$4 sm:$0xff]  }
  0x1d   : > { %993 = vmatpush3.bf16.msra.mxu0 %v1077_v1  ;;  %v1087_v5 = vld [vmem:[#allocation2 + $0x11c] ss:$20 sps:$4 sm:$0xff]   ;;  %v1080_v6 = vld [vmem:[#allocation2 + $0xa0] ss:$20 sps:$4 sm:$0xff]   ;;  %p250_p0 = scmp.lt.s32.totalorder %s1218_s19, 1  ;;  %495 = vmatprep.subr.bf16.mxu1 %v1085_v4  ;;  %v1180_v27 = vmov 0  }
  0x1e   : > { %994 = vmatprep.subr.bf16.mxu0 %v1178_v0  ;;  %v1088_v7 = vld [vmem:[#allocation2 + $0xf8] ss:$20 sps:$4 sm:$0xff]   ;;  %496 = vmatpush1.bf16.msra.mxu1 %v1087_v5  ;;  %v1090_v8 = vld [vmem:[#allocation2 + $0xf4] ss:$20 sps:$4 sm:$0xff]   ;;  %v1091_v9 = vld [vmem:[#allocation2 + $0xd0] ss:$20 sps:$4 sm:$0xff]  }
  0x1f   : > { %497 = vmatprep.subr.bf16.mxu1 %v1088_v7  ;;  %v1081_v10 = vld [vmem:[#allocation2 + $0x78] ss:$20 sps:$4 sm:$0xff]   ;;  %s1332_s19 = smov (!%p250_p0, %s1218_s19), 1  ;;  %v1082_v11 = vld [vmem:[#allocation2 + $0x50] ss:$20 sps:$4 sm:$0xff]   ;;  %527 = vmatprep.mubr.bf16.mxu1 %v1180_v27  ;;  %v406_v41 = vshrl.u32 %v405_v40, 7 }
  0x20   : > { %v1093_v12 = vld [vmem:[#allocation2 + $0xcc] ss:$20 sps:$4 sm:$0xff]   ;;  %v1094_v13 = vld [vmem:[#allocation2 + $0xa8] ss:$20 sps:$4 sm:$0xff]   ;;  %s910_s28 = sshll.u32 %s1332_s19, 3  ;;  %s963_s7 = sshll.u32 %s1332_s19, 4 }
  0x21   : > { %995 = vmatpush3.bf16.msra.mxu0 %v1078_v2  ;;  %v1096_v14 = vld [vmem:[#allocation2 + $0xa4] ss:$20 sps:$4 sm:$0xff]   ;;  %v1097_v15 = vld [vmem:[#allocation2 + $0x80] ss:$20 sps:$4 sm:$0xff]   ;;  %v1083_v16 = vld [vmem:[#allocation2 + $0x28] ss:$20 sps:$4 sm:$0xff]   ;;  %s253_s6 = scalar_lea.vmem %s1324_s0, %s910_s28  ;;  %s1273_s12 = scalar_lea.vmem %s1325_s1, %s963_s7 }
  0x22   : > { %996 = vmatprep.subr.bf16.mxu0 %v1178_v0  ;;  %498 = vmatpush1.bf16.msra.mxu1 %v1090_v8  ;;  %v1099_v17 = vld [vmem:[#allocation2 + $0x7c] ss:$20 sps:$4 sm:$0xff]   ;;  %v1100_v18 = vld [vmem:[#allocation2 + $0x58] ss:$20 sps:$4 sm:$0xff]   ;;  %v1084_v19 = vld [vmem:[#allocation2] ss:$20 sps:$4 sm:$0xff]   ;;  %s1297_s20 = scalar_lea.vmem %s1329_s5, %s963_s7  ;;  %s262_s27 = scalar_lea.vmem %s1328_s4, %s910_s28 }
  0x23   : > { %499 = vmatprep.subr.bf16.mxu1 %v1091_v9  ;;  %v269_v20 = vld [vmem:[%s253_s6] sm:$0xff]  ;;  %v1102_v21 = vld [vmem:[#allocation2 + $0x54] ss:$20 sps:$4 sm:$0xff]   ;;  %v1110_v39 = vld [vmem:[#allocation2 + $0xfc] ss:$20 sps:$4 sm:$0xff]   ;;  %v407_v42 = vsub.s32 0, %v406_v41 }
  0x24   : > { %v272_v22 = vpack.c.bf16 %v269_v20, %v269_v20  ;;  %v1103_v23 = vld [vmem:[#allocation2 + $0x30] ss:$20 sps:$4 sm:$0xff]   ;;  %v1105_v24 = vld [vmem:[#allocation2 + $0x2c] ss:$20 sps:$4 sm:$0xff]   ;;  %v1106_v25 = vld [vmem:[#allocation2 + $0x8] ss:$20 sps:$4 sm:$0xff]  }
  0x25   : > { %997 = vmatpush3.bf16.msra.mxu0 %v1079_v3  ;;  %v1108_v26 = vld [vmem:[#allocation2 + $0x4] ss:$20 sps:$4 sm:$0xff]   ;;  %v916_v28 = vld [vmem:[%s1327_s3] ss:$0 sm:$0xff]  ;;  %v403_v43 = vld [vmem:[%s1327_s3 + $0x1] sm:$0x3] }
  0x26   : > { %998 = vmatprep.subr.bf16.mxu0 %v1178_v0  ;;  %500 = vmatpush1.bf16.msra.mxu1 %v1093_v12  ;;  %v270_v31 = vld [vmem:[%s1273_s12] sm:$0xff]  ;;  %v411_v44 = vsub.s32 1, %v406_v41  ;;  %v408_v45 = vrot.slane %v403_v43, %v407_v42  ;;  %v1111_v59 = vld [vmem:[#allocation2 + $0xd4] ss:$20 sps:$4 sm:$0xff]   ;;  %v543_v62 = vand.u32 127, %v405_v40  ;;  %s1181_s15 = smov 64  }
  0x27   : > { %501 = vmatprep.subr.bf16.mxu1 %v1094_v13  ;;  %v1109_v38 = vld [vmem:[#allocation2 + $0x124] ss:$20 sps:$4 sm:$0xff]   ;;  %v1112_v60 = vld [vmem:[#allocation2 + $0xac] ss:$20 sps:$4 sm:$0xff]   ;;  %v1114_v63 = vld [vmem:[#allocation2 + $0x5c] ss:$20 sps:$4 sm:$0xff]  }
  0x28   : > { %v412_v46 = vrot.slane %v403_v43, %v411_v44  ;;  %v1113_v61 = vld [vmem:[#allocation2 + $0x84] ss:$20 sps:$4 sm:$0xff]   ;;  %vm544_vm1 = vcmp.lt.s32.totalorder %v543_v62, 64  ;;  %v1115_v5 = vld [vmem:[#allocation2 + $0x34] ss:$20 sps:$4 sm:$0xff]  }
  0x29   : > { %999 = vmatpush3.bf16.msra.mxu0 %v1080_v6  ;;  %v1116_v7 = vld [vmem:[#allocation2 + $0xc] ss:$20 sps:$4 sm:$0xff]   ;;  %v1117_v13 = vld [vmem:[#allocation2 + $0x128] ss:$20 sps:$4 sm:$0xff]  }
  0x2a   : > { %1000 = vmatprep.subr.bf16.mxu0 %v1178_v0  ;;  %502 = vmatpush1.bf16.msra.mxu1 %v1096_v14  ;;  %v271_v8 = vld [vmem:[%s1273_s12 + $0x8] sm:$0xff]  ;;  %v1118_v14 = vld [vmem:[#allocation2 + $0x100] ss:$20 sps:$4 sm:$0xff]  }
  0x2b   : > { %503 = vmatprep.subr.bf16.mxu1 %v1097_v15  ;;  %v1119_v15 = vld [vmem:[#allocation2 + $0xd8] ss:$20 sps:$4 sm:$0xff]  }
  0x2d   : > { %1001 = vmatpush3.bf16.msra.mxu0 %v1081_v10 }
  0x2e   : > { %1002 = vmatprep.subr.bf16.mxu0 %v1178_v0  ;;  %504 = vmatpush1.bf16.msra.mxu1 %v1099_v17 }
  0x2f   : > { %505 = vmatprep.subr.bf16.mxu1 %v1100_v18  ;;  %v1120_v18 = vld [vmem:[#allocation2 + $0xb0] ss:$20 sps:$4 sm:$0xff]  }
  0x31   : > { %1003 = vmatpush3.bf16.msra.mxu0 %v1082_v11 }
  0x32   : > { %1004 = vmatprep.subr.bf16.mxu0 %v1178_v0  ;;  %506 = vmatpush1.bf16.msra.mxu1 %v1102_v21  ;;  %v1121_v21 = vld [vmem:[#allocation2 + $0x88] ss:$20 sps:$4 sm:$0xff]  }
  0x33   : > { %507 = vmatprep.subr.bf16.mxu1 %v1103_v23  ;;  %v1123_v23 = vld [vmem:[#allocation2 + $0x38] ss:$20 sps:$4 sm:$0xff]  }
  0x35   : > { %1005 = vmatpush3.bf16.msra.mxu0 %v1083_v16 }
  0x36   : > { %1006 = vmatprep.subr.bf16.mxu0 %v1178_v0  ;;  %508 = vmatpush1.bf16.msra.mxu1 %v1105_v24  ;;  %v1124_v24 = vld [vmem:[#allocation2 + $0x10] ss:$20 sps:$4 sm:$0xff]  }
  0x37   : > { %509 = vmatprep.subr.bf16.mxu1 %v1106_v25 }
  0x39   : > { %1007 = vmatpush3.bf16.msra.mxu0 %v1084_v19 }
  0x3a   : > { %1012 = vmatprep.subr.bf16.mxu0 %v1178_v0  ;;  %510 = vmatpush1.bf16.msra.mxu1 %v1108_v26  ;;  %v943_v26 = vld [vmem:[%s1327_s3 + $0x3] ss:$0 sm:$0xff] }
  0x3b   : > { %1032 = vmatprep.subr.bf16.mxu1 %v1178_v0 }
  0x3c   : > { %1009 = vmatmul.mubr.bf16.vlgmr.msra.gmra.mxu0 %v272_v22  ;;  %v1122_v22 = vld [vmem:[#allocation2 + $0x60] ss:$20 sps:$4 sm:$0xff]  }
  0x3d   : > { %1028 = vmatprep.mubr.msk.bf16.mxu0 %vm1179_vm0, %v1178_v0  ;;  %1013 = vmatpush3.bf16.msra.mxu0 %v1109_v38 }
  0x3e   : > { %1014 = vmatprep.subr.bf16.mxu0 %v1178_v0 }
  0x41   : > { %1015 = vmatpush3.bf16.msra.mxu0 %v1110_v39 }
  0x42   : > { %1016 = vmatprep.subr.bf16.mxu0 %v1178_v0 }
  0x45   : > { %1017 = vmatpush3.bf16.msra.mxu0 %v1111_v59 }
  0x46   : > { %1018 = vmatprep.subr.bf16.mxu0 %v1178_v0 }
  0x49   : > { %1019 = vmatpush3.bf16.msra.mxu0 %v1112_v60 }
  0x4a   : > { %1020 = vmatprep.subr.bf16.mxu0 %v1178_v0 }
  0x4d   : > { %1021 = vmatpush3.bf16.msra.mxu0 %v1113_v61 }
  0x4e   : > { %1022 = vmatprep.subr.bf16.mxu0 %v1178_v0 }
  0x51   : > { %1023 = vmatpush3.bf16.msra.mxu0 %v1114_v63 }
  0x52   : > { %1024 = vmatprep.subr.bf16.mxu0 %v1178_v0 }
  0x55   : > { %1025 = vmatpush3.bf16.msra.mxu0 %v1115_v5 }
  0x56   : > { %1026 = vmatprep.subr.bf16.mxu0 %v1178_v0 }
  0x59   : > { %1027 = vmatpush3.bf16.msra.mxu0 %v1116_v7 }
  0xfc   : > { %v378_v29 = vpop.f32.mrf.mxu0 }
  0xfd   : > { %v379_v30 = vadd.f32 %v916_v28, %v378_v29 }
  0xfe   : > { %v1010_v32 = vpop.f32.mrf.mxu0 }
  0xff   : > { %v384_v33 = vmax.f32 %v379_v30, 0.0 }
 0x100   : > { %v381_v34 = vpop.f32.mrf.mxu0 }
 0x101   : > { %v385_v35 = vadd.f32 %v384_v33, %v270_v31 }
 0x102   : > { %v1011_v36 = vpop.f32.mrf.mxu0 }
 0x103   : > { %v386_v37 = vpack.c.bf16 %v385_v35, %v385_v35 }
 0x105   : > { %528 = vmatmul.mubr.bf16.vlgmr.msra.gmra.mxu1 %v386_v37 }
 0x106   : > { %1048 = vmatprep.mubr.msk.bf16.mxu1 %vm1179_vm0, %v1178_v0  ;;  %1033 = vmatpush3.bf16.msra.mxu1 %v1117_v13 }
 0x107   : > { %1034 = vmatprep.subr.bf16.mxu1 %v1178_v0 }
 0x10a   : > { %1035 = vmatpush3.bf16.msra.mxu1 %v1118_v14 }
 0x10b   : > { %1036 = vmatprep.subr.bf16.mxu1 %v1178_v0 }
 0x10e   : > { %1037 = vmatpush3.bf16.msra.mxu1 %v1119_v15 }
 0x10f   : > { %1038 = vmatprep.subr.bf16.mxu1 %v1178_v0 }
 0x112   : > { %1039 = vmatpush3.bf16.msra.mxu1 %v1120_v18 }
 0x113   : > { %1040 = vmatprep.subr.bf16.mxu1 %v1178_v0 }
 0x116   : > { %1041 = vmatpush3.bf16.msra.mxu1 %v1121_v21 }
 0x117   : > { %1042 = vmatprep.subr.bf16.mxu1 %v1178_v0 }
 0x11a   : > { %1043 = vmatpush3.bf16.msra.mxu1 %v1122_v22 }
 0x11b   : > { %1044 = vmatprep.subr.bf16.mxu1 %v1178_v0 }
 0x11e   : > { %1045 = vmatpush3.bf16.msra.mxu1 %v1123_v23 }
 0x11f   : > { %1046 = vmatprep.subr.bf16.mxu1 %v1178_v0  ;;  %v952_v0 = vld [vmem:[%s1327_s3 + $0x4] ss:$0 sm:$0xff] }
 0x122   : > { %1047 = vmatpush3.bf16.msra.mxu1 %v1124_v24 }
 0x1c5   : > { %v529_v47 = vpop.f32.mrf.mxu1 }
 0x1c6   : > { %v530_v48 = vadd.f32 %v529_v47, %v408_v45 }
 0x1c7   : > { %v531_v49 = vpop.f32.mrf.mxu1 }
 0x1c8   : > { %v941_v50 = vmul.f32 -1.442695, %v530_v48  ;;  %v532_v51 = vadd.f32 %v531_v49, %v412_v46 }
 0x1c9   : > { %v533_v52 = vpop.f32.mrf.mxu1 }
 0x1ca   : > { %1125 = vpow2.f32 %v941_v50  ;;  %v942_v53 = vmul.f32 -1.442695, %v532_v51 }
 0x1cb   : > { %v534_v54 = vpop.f32.mrf.mxu1 }
 0x1cc   : > { %1127 = vpow2.f32 %v942_v53 }
 0x1d7   : > { %v1126_v55 = vpop.eup %1125 }
 0x1d8   : > { %v539_v56 = vadd.f32 1.0, %v1126_v55 }
 0x1d9   : > { %v1128_v57 = vpop.eup %1127 }
 0x1da   : > { %1129 = vrcp.f32 %v539_v56  ;;  %v549_v58 = vadd.f32 1.0, %v1128_v57 }
 0x1db   : > { %1131 = vtanh.f32 %v532_v51 }
 0x1dc   : > { %1133 = vrcp.f32 %v549_v58 }
 0x1e7   : > { %v1130_v1 = vpop.eup %1129 }
 0x1e8   : > { %v1132_v2 = vpop.eup %1131  ;;  %553 = vrot.lane.b32.xlu0 %v1130_v1, %s1181_s15 }
 0x1e9   : > { %v1134_v3 = vpop.eup %1133 }
 0x1ea   : > { %v552_v4 = vsel %vm544_vm1, %v1132_v2, %v1134_v3 }
 0x1eb   : > { %v558_v6 = vmul.f32 %v1130_v1, %v552_v4 }
 0x1ec   : > { %555 = vrot.lane.b32.xlu0 %v552_v4, %s1181_s15 }
 0x25a   : > { %v554_v9 = vpop.permute.xlu0 %553 }
 0x25b   : > { %v557_v10 = vmul.f32 %v554_v9, %v271_v8 }
 0x25d   : > { %v559_v11 = vadd.f32 %v558_v6, %v557_v10 }
 0x25e   : > { %v556_v17 = vpop.permute.xlu0 %555 }
 0x25f   : > { %v560_v12 = vsel %vm544_vm1, %v559_v11, 0.0 }
 0x260   : > { %1135 = vtanh.f32 %v560_v12  ;;  %792 = vst [vmem:[%s1297_s20 + $0x8] sm:$0xff] %v560_v12 }
 0x26d   : > { %v1136_v16 = vpop.eup %1135 }
 0x26e   : > { %v562_v19 = vmul.f32 %v1136_v16, %v556_v17 }
 0x270   : > { %v563_v20 = vpack.c.bf16 %v562_v19, %v562_v19  ;;  %789 = vrot.lane.b32.xlu1 %v562_v19, %s1181_s15 }
 0x272   : > { %1029 = vmatmul.mubr.bf16.vlgmr.msra.gmra.mxu0 %v563_v20 }
 0x2e2   : > { %v790_v25 = vpop.permute.xlu1 %789 }
 0x2e3   : > { %791 = vst [vmem:[%s1297_s20] sm:$0xff] %v790_v25 }
 0x332   : > { %v669_v27 = vpop.f32.mrf.mxu0 }
 0x333   : > { %v670_v28 = vadd.f32 %v943_v26, %v669_v27 }
 0x334   : > { %v1030_v29 = vpop.f32.mrf.mxu0 }
 0x335   : > { %v675_v30 = vmax.f32 %v670_v28, 0.0 }
 0x336   : > { %v672_v31 = vpop.f32.mrf.mxu0 }
 0x337   : > { %v676_v32 = vpack.c.bf16 %v675_v30, %v675_v30 }
 0x338   : > { %v1031_v33 = vpop.f32.mrf.mxu0 }
 0x339   : > { %1049 = vmatmul.mubr.bf16.vlgmr.msra.gmra.mxu1 %v676_v32 }
 0x3f9   : > { %v782_v34 = vpop.f32.mrf.mxu1 }
 0x3fa   : > { %v783_v35 = vadd.f32 %v952_v0, %v782_v34 }
 0x3fb   : > { %v1050_v36 = vpop.f32.mrf.mxu1 }
 0x3fc   : > { %788 = vst [vmem:[%s262_s27] sm:$0xff] %v783_v35 }
 0x3fd   : > { %v785_v37 = vpop.f32.mrf.mxu1 }
 0x3ff   : > { %v1051_v38 = vpop.f32.mrf.mxu1 }
 0x400 PF: > { %s17_s18 = sadd.s32 1, %s1173_s18  }
 0x401   : > { %p14_p1 = scmp.ge.s32.totalorder %s17_s18, 4  }
 0x403   :  { %16 = sbr.rel (!%p14_p1) target bundleno = 1 (0x1), region = 86 }
 0x408   :  { %828 = vsyncpa [#allocation3], 1 }
 0x409   :  { %830 = vsyncpa [#allocation3 + $0x1], 1 }

</bundles_post_ra>
